<compile_context>
chip_gen: v5e
topology: v5e:2x2
jax: 0.10.0
libtpu: 0.0.40
codegen_flags: <defaults>
</compile_context>

<pallas_src>
import math
import functools

import jax
import jax.numpy as jnp
from jax.experimental import pallas as pl
from jax.experimental.pallas import tpu as pltpu


def _round_up(n: int, m: int) -> int:
    return ((n + m - 1) // m) * m


def _round_down(n: int, m: int) -> int:
    return (n // m) * m


# ---------------------------------------------------------------------------
# PE table construction (matches the PyTorch double loop EXACTLY, including
# the cos divisor 10000**(2*(i+1)/d_model) -- that is what model.py computes,
# even though it differs from the canonical "Attention Is All You Need" PE).
# ---------------------------------------------------------------------------
def make_pe_table(d_model: int, max_seq_len: int, dtype=jnp.float32) -> jnp.ndarray:
    assert d_model % 2 == 0, "d_model must be even (as implied by the loop)"
    pos = jnp.arange(max_seq_len, dtype=jnp.float32)[:, None]        # (L, 1)
    i_even = jnp.arange(0, d_model, 2, dtype=jnp.float32)[None, :]    # (1, D/2)

    div_sin = jnp.power(10000.0, 2.0 * i_even / d_model)              # (1, D/2)
    div_cos = jnp.power(10000.0, 2.0 * (i_even + 1.0) / d_model)      # (1, D/2)

    pe_sin = jnp.sin(pos / div_sin)                                    # (L, D/2)
    pe_cos = jnp.cos(pos / div_cos)                                    # (L, D/2)

    # interleave: even columns <- sin, odd columns <- cos
    pe = jnp.stack([pe_sin, pe_cos], axis=-1).reshape(max_seq_len, d_model)
    return pe[None, :, :].astype(dtype)                                # (1, L, D)


# ---------------------------------------------------------------------------
# Pallas kernel: y = x * sqrt(d_model) + pe   (f32 compute, cast on store)
# ---------------------------------------------------------------------------
def pe_add_kernel(x_ref, pe_ref, o_ref, *, scale):
    x = x_ref[...].astype(jnp.float32)
    p = pe_ref[...].astype(jnp.float32)
    o_ref[...] = (x * scale + p).astype(o_ref.dtype)


def _physical_vmem_bytes() -> int:
    """Physical VMEM of the local TPU; conservative (v7x-class) fallback."""
    try:
        info = pltpu.get_tpu_info()
        v = getattr(info, "vmem_capacity_bytes", None)
        if v:
            return int(v)
    except Exception:
        pass
    return 64 << 20


# ---------------------------------------------------------------------------
# Wrapper
# ---------------------------------------------------------------------------
def positional_encoder(x: jnp.ndarray, pe_full: jnp.ndarray,
                       d_model: int) -> jnp.ndarray:
    """x: (B, S, D) f32/bf16; pe_full: (1, max_seq_len, D) (any float dtype)."""
    B, S, D = x.shape
    assert D == d_model
    assert pe_full.shape[0] == 1 and pe_full.shape[2] == D
    L = pe_full.shape[1]
    assert L >= S

    x_item = jnp.dtype(x.dtype).itemsize
    pe_item = jnp.dtype(pe_full.dtype).itemsize

    # ---- lane-dense layout (full 128-lane vst on the store path) ---------
    mode = "direct"
    if D % 128 == 0:
        rows, lanes = S, D
        pe_rows = L
        x2, pe2 = x, pe_full                                 # pe_full unsliced
    elif (S * D) % 128 == 0:
        mode = "reshape"
        rows, lanes = (S * D) // 128, 128
        x2 = x.reshape(B, rows, lanes)
        if (L * D) % 128 == 0:
            pe_rows = (L * D) // 128
            pe2 = pe_full.reshape(1, pe_rows, lanes)         # contiguous: free
        else:
            # rare: full table doesn't reshape cleanly -> small glue slice
            pe_rows = rows
            pe2 = jax.lax.slice(pe_full, (0, 0, 0), (1, S, D)).reshape(1, rows, lanes)
    else:
        # Pad the feature dim to a multiple of 128: the padding copy is
        # cheaper than streaming everything through masked partial stores.
        mode = "pad"
        lanes = _round_up(D, 128)
        rows, pe_rows = S, L
        x2 = jnp.pad(x, ((0, 0), (0, 0), (0, lanes - D)))
        pe2 = jnp.pad(pe_full, ((0, 0), (0, 0), (0, lanes - D)))

    # ---- per-generation tile sizing (actual itemsizes, queried VMEM) -----
    sublane_mult = 8 * max(1, 4 // min(x_item, pe_item))     # f32:8, bf16:16
    phys_vmem = _physical_vmem_bytes()
    # Total pipeline-buffer budget (x + pe + out tiles, double-buffered).
    buffer_budget = (60 << 20) if phys_vmem >= (100 << 20) else (28 << 20)

    bytes_per_row = lanes * (2 * x_item + pe_item)           # x + out + pe
    tR = max(sublane_mult,
             _round_down(buffer_budget // (2 * bytes_per_row), sublane_mult))
    tR = min(tR, _round_up(rows, sublane_mult))
    # Prefer >= 2 row tiles so v7x megacore can split the row axis (each core
    # keeps the "pe read once per row tile" property); ~neutral on v5e/v6e.
    if pl.cdiv(rows, tR) < 2 and rows > sublane_mult:
        tR = _round_up(pl.cdiv(rows, 2), sublane_mult)
    if tR > rows:                      # tiny shapes: full-extent row block
        tR = rows
    if tR % sublane_mult != 0 and pe_rows != rows:
        # Full-extent (non sublane-aligned) block: pe's block must then equal
        # pe's own row dim too -> trim pe to `rows` (few-KiB glue, tiny only).
        pe2 = pe2[:, :rows, :]
        pe_rows = rows

    buffers_bytes = 2 * tR * lanes * (2 * x_item + pe_item)
    vmem_cap = (96 << 20) if phys_vmem >= (100 << 20) else (48 << 20)
    vmem_limit = int(min(vmem_cap, max(32 << 20, buffers_bytes + (16 << 20))))

    # Row tiles OUTER, batch INNER: pe's block index is constant across the
    # inner batch loop, so it is DMA'd once per row tile (not once per step).
    grid = (pl.cdiv(rows, tR), B)
    kernel = functools.partial(pe_add_kernel, scale=math.sqrt(d_model))

    out = pl.pallas_call(
        kernel,
        out_shape=jax.ShapeDtypeStruct((B, rows, lanes), x.dtype),
        grid_spec=pltpu.PrefetchScalarGridSpec(
            num_scalar_prefetch=0,
            grid=grid,
            in_specs=[
                # x: depends on both grid axes.
                pl.BlockSpec((1, tR, lanes), lambda s, b: (b, s, 0)),
                # pe: independent of b (inner axis) -> stays VMEM-resident.
                pl.BlockSpec((1, tR, lanes), lambda s, b: (0, s, 0)),
            ],
            out_specs=pl.BlockSpec((1, tR, lanes), lambda s, b: (b, s, 0)),
        ),
        compiler_params=pltpu.CompilerParams(
            # Row axis "parallel" (megacore split), batch "arbitrary".
            dimension_semantics=("parallel", "arbitrary"),
            vmem_limit_bytes=vmem_limit),
    )(x2, pe2)

    if mode == "reshape":
        out = out.reshape(B, S, D)
    elif mode == "pad":
        out = out[:, :, :D]
    return out


# ---------------------------------------------------------------------------
# Pure-JAX reference (mirrors the PyTorch forward)
# ---------------------------------------------------------------------------
def positional_encoder_ref(x, pe_full, d_model):
    S = x.shape[1]
    return (x.astype(jnp.float32) * math.sqrt(d_model)
            + pe_full[:, :S].astype(jnp.float32))


if __name__ == "__main__":
    key = jax.random.PRNGKey(0)

    # ---- 1. small shape (the module's toy config), f32 -------------------
    d_model, max_seq_len = 32, 64
    batch, seq_len = 2, 8
    x = jax.random.normal(key, (batch, seq_len, d_model), dtype=jnp.float32)
    pe_f32 = make_pe_table(d_model, max_seq_len)

    y = jax.block_until_ready(positional_encoder(x, pe_f32, d_model))
    y_ref = positional_encoder_ref(x, pe_f32, d_model)
    assert y.shape == (batch, seq_len, d_model)
    assert jnp.allclose(y, y_ref, atol=1e-5, rtol=1e-5)

    # ---- 2. same shape, bf16 I/O with a bf16 PE table (halves pe traffic) -
    x_bf16 = x.astype(jnp.bfloat16)
    pe_bf16 = make_pe_table(d_model, max_seq_len, dtype=jnp.bfloat16)
    y_bf16 = jax.block_until_ready(positional_encoder(x_bf16, pe_bf16, d_model))
    y_bf16_ref = positional_encoder_ref(x_bf16.astype(jnp.float32), pe_f32, d_model)
    assert y_bf16.dtype == jnp.bfloat16
    assert jnp.allclose(y_bf16.astype(jnp.float32), y_bf16_ref,
                        atol=0.2, rtol=0.05)

    # ---- 3. ragged rows + max_seq_len > S: exercises the cdiv grid, the
    #         unsliced pe table, and the partial final block ---------------
    d_model3, max_seq_len3 = 256, 512
    batch3, seq_len3 = 3, 136
    x3 = jax.random.normal(jax.random.PRNGKey(0),
                           (batch3, seq_len3, d_model3), dtype=jnp.float32)
    pe3 = make_pe_table(d_model3, max_seq_len3)
    y3 = jax.block_until_ready(positional_encoder(x3, pe3, d_model3))
    y3_ref = positional_encoder_ref(x3, pe3, d_model3)
    assert y3.shape == (batch3, seq_len3, d_model3)
    assert jnp.allclose(y3, y3_ref, atol=1e-4, rtol=1e-4)

    # ---- 4. realistic transformer shape: multi-tile grid + pe residency
    #         across the inner batch axis ----------------------------------
    d_model4, max_seq_len4 = 512, 4096
    batch4, seq_len4 = 2, 4096
    x4 = jax.random.normal(jax.random.PRNGKey(0),
                           (batch4, seq_len4, d_model4), dtype=jnp.float32)
    pe4 = make_pe_table(d_model4, max_seq_len4)
    y4 = jax.block_until_ready(positional_encoder(x4, pe4, d_model4))
    y4_ref = positional_encoder_ref(x4, pe4, d_model4)
    assert y4.shape == (batch4, seq_len4, d_model4)
    assert jnp.allclose(y4, y4_ref, atol=1e-4, rtol=1e-4)

    print("KERNEL_OK")
</pallas_src>

<mosaic_0001>
module attributes {stable_mosaic.version = 11 : i64} {
  func.func @pe_add_kernel(%arg0: i32, %arg1: i32, %arg2: memref<1x2x128xf32, #tpu.memory_space<vmem>>, %arg3: memref<1x2x128xf32, #tpu.memory_space<vmem>>, %arg4: memref<1x2x128xf32, #tpu.memory_space<vmem>>) attributes {dimension_semantics = [#tpu.dimension_semantics<parallel>, #tpu.dimension_semantics<arbitrary>], iteration_bounds = array<i64: 1, 2>, scalar_prefetch = 0 : i64, scratch_operands = 0 : i64, tpu.core_type = #tpu.core_type<tc>, window_params = [{transform_indices = @transform_0, window_bounds = array<i64: 1, 2, 128>}, {transform_indices = @transform_1, window_bounds = array<i64: 1, 2, 128>}, {transform_indices = @transform_2, window_bounds = array<i64: 1, 2, 128>}]} {
    %c0 = arith.constant 0 : index
    %c0_0 = arith.constant 0 : index
    %c0_1 = arith.constant 0 : index
    %0 = vector.load %arg2[%c0, %c0_0, %c0_1] : memref<1x2x128xf32, #tpu.memory_space<vmem>>, vector<1x2x128xf32>
    %c0_2 = arith.constant 0 : index
    %c0_3 = arith.constant 0 : index
    %c0_4 = arith.constant 0 : index
    %1 = vector.load %arg3[%c0_2, %c0_3, %c0_4] : memref<1x2x128xf32, #tpu.memory_space<vmem>>, vector<1x2x128xf32>
    %cst = arith.constant 5.65685415 : f32
    %2 = vector.broadcast %cst : f32 to vector<1x2x128xf32>
    %3 = arith.mulf %0, %2 : vector<1x2x128xf32>
    %4 = arith.addf %3, %1 : vector<1x2x128xf32>
    %c0_5 = arith.constant 0 : index
    %c0_6 = arith.constant 0 : index
    %c0_7 = arith.constant 0 : index
    %5 = vector.load %arg4[%c0_5, %c0_6, %c0_7] : memref<1x2x128xf32, #tpu.memory_space<vmem>>, vector<1x2x128xf32>
    tpu.vector_store %arg4[%c0_5, %c0_6, %c0_7], %4 {strides = array<i32>} : memref<1x2x128xf32, #tpu.memory_space<vmem>>, vector<1x2x128xf32>,
    return
  }
  func.func @transform_0(%arg0: i32, %arg1: i32) -> (i32, i32, i32) {
    %c0_i32 = arith.constant 0 : i32
    %c0_i32_0 = arith.constant 0 : i32
    return %arg1, %arg0, %c0_i32 : i32, i32, i32
  }
  func.func @transform_1(%arg0: i32, %arg1: i32) -> (i32, i32, i32) {
    %c0_i32 = arith.constant 0 : i32
    %c0_i32_0 = arith.constant 0 : i32
    %c0_i32_1 = arith.constant 0 : i32
    return %c0_i32, %arg0, %c0_i32_0 : i32, i32, i32
  }
  func.func @transform_2(%arg0: i32, %arg1: i32) -> (i32, i32, i32) {
    %c0_i32 = arith.constant 0 : i32
    %c0_i32_0 = arith.constant 0 : i32
    return %arg1, %arg0, %c0_i32 : i32, i32, i32
  }
}

</mosaic_0001>

<bundles_post_ra>
// kernel: tpu_custom_call.1
= control target key start
LH: loop header
LB: loop body
LE: loop exit
PB: predicated region body
PF: predicated region fallthrough
CT: control target
= control target key end

     0   :  { %7 = vsyncpa [#allocation3], 0  ;;  %s715_s0 = inlined_call_operand.hbm [shape: f32[2,2,128], index: 0, kind: input, shape index: {}]   ;;  %s716_s1 = inlined_call_operand.hbm [shape: f32[1,2,128], index: 1, kind: input, shape index: {}]   ;;  %s717_s2 = inlined_call_operand.hbm [shape: f32[2,2,128], index: 2, kind: output, shape index: {}]  }
   0x1   :  { %9 = vsyncpa [#allocation3 + $0x1], 0 }
   0x2   :  { %10 = vsyncpa [#allocation6], 0 }
   0x3   :  { %11 = vsyncpa [#allocation4], 0 }
   0x4   :  { %13 = vsyncpa [#allocation4 + $0x1], 0  ;;  %s566_s9 = smov 0   ;;  %s568_s10 = smov 0  }
   0x5   :  { %s570_s11 = smov 0   ;;  %s572_s12 = smov 0  }
   0x6   :  { %s574_s13 = smov 0   ;;  %s576_s14 = smov 0  }
   0x7 LB: > { %s314_s15 = sadd.s32 4294967295, %s548_s14   ;;  %s315_s16 = sadd.s32 4294967294, %s548_s14   ;;  %s548_s14 = sphi %s576_s14, %s19_s14   ;;  %s544_s13 = sphi %s574_s13, %s729_s13   ;;  %s540_s12 = sphi %s572_s12, %s728_s12   ;;  %s536_s11 = sphi %s570_s11, %s727_s11   ;;  %s532_s10 = sphi %s568_s10, %s726_s10   ;;  %s528_s9 = sphi %s566_s9, %s725_s9  }
   0x8   : > { %p53_p0 = scmp.ne.s32.totalorder %s532_s10, %s528_s9  ;;  %p600_p1 = scmp.eq.s32.totalorder %s314_s15, 0 }
   0x9   : > { %p604_p2 = scmp.eq.s32.totalorder %s314_s15, 1  ;;  %p111_p3 = scmp.eq.s32.totalorder %s315_s16, 1 }
   0xa   : > { %p610_p4 = por %p600_p1, %p53_p0  ;;  %p316_p5 = scmp.ge.s32.totalorder %s548_s14, 1 }
   0xb   : > { %p615_p6 = por %p111_p3, %p53_p0  ;;  %p118_p7 = scmp.lt.s32.totalorder %s548_s14, 3 }
   0xc   : > { %s132_s23 = sshll.u32 %s716_s1, 4  ;;  %p318_p9 = scmp.ge.s32.totalorder %s548_s14, 2  ;;  %s133_s23 = int_to_ptr.hbm [resolvable:$true] %s132_s23 }
   0xd   : > { %p623_p8 = pnand %p316_p5, %p118_p7  ;;  %s550_s25 = smov [#allocation5]  }
   0xe   : > { %s134_s26 = sshll.u32 %s550_s25, 4  ;;  %s28_s27 = sadd.s32 1, %s544_s13  ;;  %s135_s26 = int_to_ptr.vmem [resolvable:$true] %s134_s26 }
   0xf   : > { %p337_p10 = pneg %p623_p8  ;;  %p29_p12 = scmp.ge.s32.totalorder %s28_s27, 2 }
  0x10   : > { %s40_s28 = sadd.s32 1, %s536_s11  ;;  %p47_p13 = scmp.ne.s32.totalorder %s536_s11, %s532_s10 }
  0x11   : > { %p338_p11 = pnand %p337_p10, %p600_p1  ;;  %p48_p0 = scmp.eq.s32.totalorder %s548_s14, 0 }
  0x12   : > { %s731_s27 = smov (%p29_p12, %s28_s27), 0  ;;  %p645_p5 = por %p604_p2, %p47_p13 }
  0x13   : > { %340 = dma.hbm_to_vmem [thread:$0]  (!%p338_p11), %s133_s23, 32, %s135_s26, [#allocation6]  }
  0x14   : > { %p639_p3 = por %p48_p0, %p47_p13  ;;  %s35_s3 = ssub.s32 %s544_s13, %s731_s27 }
  0x15   : > { %p350_p7 = scmp.lt.s32.totalorder %s548_s14, 2  ;;  %p38_p10 = scmp.eq.s32.totalorder %s35_s3, 0 }
  0x16   : > { %s145_s4 = sand.u32 1, %s536_s11   ;;  %s320_s7 = sshll.u32 %s544_s13, 1 }
  0x17   : > { %s319_s5 = sshll.u32 %s145_s4, 1  ;;  %s154_s16 = scalar_lea.hbm %s715_s0, %s320_s7 }
  0x18   : > { %s654_s6 = scalar_select %p38_p10, %s536_s11, %s40_s28  }
  0x19   : > { %s149_s21 = scalar_lea.vmem [#allocation2], %s319_s5  ;;  %s156_s18 = sshll.u32 %s154_s16, 4  ;;  %s157_s18 = int_to_ptr.hbm [resolvable:$true] %s156_s18 }
  0x1a   : > { %s158_s22 = sshll.u32 %s149_s21, 4  ;;  %p342_p2 = pnand %p350_p7, %p639_p3  ;;  %s159_s22 = int_to_ptr.vmem [resolvable:$true] %s158_s22 }
  0x1b   : > { %s146_s23 = scalar_lea.sflag [#allocation3], %s145_s4  ;;  %167 = sbr.rel (%p623_p8) target bundleno = 50 (0x32), region = 28 }
  0x1c   : > { %344 = dma.hbm_to_vmem [thread:$0]  (!%p342_p2), %s157_s18, 32, %s159_s22, %s146_s23  }
  0x1d   : > { %s665_s25 = sand.u32 (!%p623_p8), 1, %s532_s10  }
  0x1e   : > { %s322_s26 = sshll.u32 (!%p623_p8), %s665_s25, 1  ;;  %s170_s28 = scalar_lea.sflag (!%p623_p8), [#allocation3], %s665_s25 }
  0x1f   : > { %s173_s3 = scalar_lea.vmem (!%p623_p8), [#allocation2], %s322_s26 }
  0x20   : > { %515 = dma.done.wait (%p610_p4), %s170_s28, 32  }
  0x21   : > { %517 = vsyncadd (%p610_p4), %s170_s28, 4294967264 }
  0x22   : > { %519 = dma.done.wait (%p600_p1), [#allocation6], 32  }
  0x23   : > { %521 = vsyncadd (%p600_p1), [#allocation6], 4294967264  ;;  %s326_s24 = sshll.u32 %s540_s12, 1  ;;  %v200_v0 = vld [vmem:[%s173_s3] sm:$0x3]  ;;  %s199_s7 = scalar_lea.vmem [#allocation7], %s322_s26 }
  0x24   : > { %s217_s5 = scalar_lea.hbm %s717_s2, %s326_s24  ;;  %v201_v1 = vld [vmem:[#allocation5] sm:$0x3]  ;;  %s219_s8 = sshll.u32 %s199_s7, 4  ;;  %v202_v2 = vmul.f32 5.656854, %v200_v0  ;;  %s220_s8 = int_to_ptr.vmem [resolvable:$true] %s219_s8 }
  0x25   : > { %s221_s19 = sshll.u32 %s217_s5, 4  ;;  %s206_s17 = scalar_lea.sflag [#allocation4], %s665_s25  ;;  %s222_s19 = int_to_ptr.hbm [resolvable:$true] %s221_s19 }
  0x26   : > { %v203_v3 = vadd.f32 %v202_v2, %v201_v1  ;;  %s476_s15 = sshra.s32 %s222_s19, 4  ;;  %s482_s22 = scalar_lea.hbm %s717_s2, 4  ;;  %s477_s15 = int_to_ptr.hbm [resolvable:$true] %s476_s15 }
  0x27   : > { %s478_s16 = scalar_lea.hbm %s477_s15, 2  ;;  %p483_p11 = scmp.lt.s32.totalorder %s477_s15, %s717_s2 }
  0x28   : > { %204 = vst [vmem:[%s199_s7] sm:$0x3] %v203_v3  ;;  %p479_p1 = scmp.ne.s32.totalorder %s477_s15, %s478_s16  ;;  %p484_p12 = scmp.lt.s32.totalorder %s482_s22, %s478_s16 }
  0x2a   : > { %p480_p4 = pnand %p479_p1, %p645_p5  ;;  %p485_p13 = por %p484_p12, %p483_p11 }
  0x2c   : > { %p481_p8 = pneg %p480_p4 }
  0x2e   : > { %p486_p0 = pnand %p485_p13, %p481_p8 }
  0x30   : > { %489 = shalt.err (!%p486_p0)
}
  0x31   : > { %335 = dma.vmem_to_hbm [thread:$0]  (%p645_p5), %s220_s8, 32, %s222_s19, %s206_s17  }
  0x32 PF: > { %s233_s25 = sand.u32 1, %s528_s9   ;;  %p346_p3 = pnand %p318_p9, %p615_p6 }
  0x33   : > { %s234_s26 = scalar_lea.sflag [#allocation4], %s233_s25 }
  0x34   : > { %p347_p7 = pneg %p346_p3 }
  0x36   : > { %523 = dma.done.wait (%p347_p7), %s234_s26, 32  }
  0x37   : > { %525 = vsyncadd (%p347_p7), %s234_s26, 4294967264  ;;  %s19_s14 = sadd.s32 1, %s548_s14   ;;  %s725_s9 = smov %s532_s10 }
  0x38   : > { %p16_p10 = scmp.ge.s32.totalorder %s19_s14, 4   ;;  %s726_s10 = smov %s536_s11 }
  0x39   : > { %s727_s11 = smov %s654_s6  ;;  %s728_s12 = smov %s544_s13 }
  0x3a   : > { %s729_s13 = smov %s731_s27  ;;  %18 = sbr.rel (!%p16_p10) target bundleno = 7 (0x7), region = 78 }
  0x3f   :  { %240 = vsyncpa [#allocation3], 1 }
  0x40   :  { %242 = vsyncpa [#allocation3 + $0x1], 1 }
  0x41   :  { %243 = vsyncpa [#allocation6], 1 }
  0x42   :  { %244 = vsyncpa [#allocation4], 1 }
  0x43   :  { %246 = vsyncpa [#allocation4 + $0x1], 1 }

</bundles_post_ra>
